<compile_context>
chip_gen: v7x
topology: tpu7x:2x2x1
jax: 0.10.0
libtpu: 0.0.40
codegen_flags: <defaults>
</compile_context>

<pallas_src>
import jax
import jax.numpy as jnp
from jax import lax
from jax.experimental import pallas as pl
from jax.experimental.pallas import tpu as pltpu

IN_F = 40
HID = 64


def mlp_kernel(x_ref, w1_ref, b1_ref, w2_ref, b2_ref, o_ref):
    # x: (TB, 40), w1: (40, 64), b1: (1, 64), w2: (1, 64) row, b2: (1, 1) in SMEM.
    # Layer 1 on the MXU with f32 accumulation, ReLU on the VPU.
    h = jnp.dot(x_ref[...], w1_ref[...], preferred_element_type=jnp.float32) + b1_ref[...]
    h = jnp.maximum(h, 0.0)                                    # (TB, 64)

    # Layer 2 (out_features == 1), produced lane-dense as a (1, TB) row:
    #   y[0, m] = sum_k w2[0, k] * h[m, k]
    y = lax.dot_general(
        w2_ref[...], h,
        dimension_numbers=(((1,), (1,)), ((), ())),
        preferred_element_type=jnp.float32,
    )                                                          # (1, TB)
    y = y + b2_ref[0, 0]                                       # scalar bias from SMEM

    # Sigmoid epilogue on the EUP slot; unmasked full-lane store.
    o_ref[...] = jax.nn.sigmoid(y).astype(o_ref.dtype)


def _round_up(n, m):
    return ((n + m - 1) // m) * m


def simple_stress_model(x, w1, b1, w2, b2, *, tb=8192):
    B, F = x.shape
    assert F == IN_F, (B, F)

    # Batch tile: multiple of 8 sublanes, capped at tb rows.  At TB=8192 the
    # double-buffered x tiles are ~8 MiB (40->128 lane pad) and the (1,TB)
    # lane-dense output tiles ~0.5 MiB — well inside the 32 MiB limit below.
    TB = min(tb, _round_up(B, 8))
    num_tiles = pl.cdiv(B, TB)
    grid = (num_tiles,)

    # Feed w2 as a lane-major (1, 64) row; b2 as a (1, 1) scalar for SMEM.
    w2_row = w2.reshape(1, HID)
    b2_s = b2.reshape(1, 1)

    param_bytes = 4 * (w1.size + b1.size + w2.size + b2.size)
    cost = pl.CostEstimate(
        flops=2 * B * (IN_F * HID) + 2 * B * HID,
        transcendentals=2 * B,                       # exp + reciprocal per row
        bytes_accessed=B * (IN_F + 1) * 4 + param_bytes,
    )

    out = pl.pallas_call(
        mlp_kernel,
        out_shape=jax.ShapeDtypeStruct((num_tiles, TB), x.dtype),
        grid=grid,
        in_specs=[
            pl.BlockSpec((TB, IN_F), lambda i: (i, 0)),      # x: streamed per batch tile
            pl.BlockSpec((IN_F, HID), lambda i: (0, 0)),     # w1: resident across the grid
            pl.BlockSpec((1, HID), lambda i: (0, 0)),        # b1: resident
            pl.BlockSpec((1, HID), lambda i: (0, 0)),        # w2 (row): resident
            pl.BlockSpec(memory_space=pltpu.MemorySpace.SMEM),  # b2: scalar in SMEM
        ],
        out_specs=pl.BlockSpec((1, TB), lambda i: (i, 0)),   # lane-dense output row
        compiler_params=pltpu.CompilerParams(
            dimension_semantics=("parallel",),               # shard batch tiles across TCs (v7x)
            vmem_limit_bytes=32 * 1024 * 1024,
        ),
        cost_estimate=cost,
    )(x, w1, b1, w2_row, b2_s)

    # Ragged tail rows of the last tile are compute-garbage; slice them away.
    return out.reshape(num_tiles * TB)[:B].reshape(B, 1)


def init_params(key):
    # Deterministic init mimicking nn.Linear's uniform(-1/sqrt(fan_in), 1/sqrt(fan_in)).
    k1, k2, k3, k4 = jax.random.split(key, 4)
    bound1 = 1.0 / jnp.sqrt(float(IN_F))
    bound2 = 1.0 / jnp.sqrt(float(HID))
    # Stored as (in, out) — i.e. the transpose of PyTorch's (out, in) weight.
    w1 = jax.random.uniform(k1, (IN_F, HID), jnp.float32, -bound1, bound1)
    b1 = jax.random.uniform(k2, (1, HID), jnp.float32, -bound1, bound1)
    w2 = jax.random.uniform(k3, (HID, 1), jnp.float32, -bound2, bound2)
    b2 = jax.random.uniform(k4, (1, 1), jnp.float32, -bound2, bound2)
    return w1, b1, w2, b2


def reference(x, w1, b1, w2, b2):
    h = jnp.maximum(x @ w1 + b1, 0.0)
    return jax.nn.sigmoid(h @ w2 + b2)


if __name__ == "__main__":
    key = jax.random.PRNGKey(0)
    kx, kp = jax.random.split(key)
    batch = 8
    x = jax.random.normal(kx, (batch, IN_F), jnp.float32)
    w1, b1, w2, b2 = init_params(kp)

    out = simple_stress_model(x, w1, b1, w2, b2)
    out = jax.block_until_ready(out)

    ref = reference(x, w1, b1, w2, b2)
    assert out.shape == (batch, 1), out.shape
    assert jnp.allclose(out, ref, atol=1e-5, rtol=1e-5), "mismatch vs reference"
    print("KERNEL_OK")
</pallas_src>

<mosaic_0001>
module attributes {stable_mosaic.version = 11 : i64} {
  func.func @mlp_kernel(%arg0: i32, %arg1: memref<8x40xf32, #tpu.memory_space<vmem>>, %arg2: memref<40x64xf32, #tpu.memory_space<vmem>>, %arg3: memref<1x64xf32, #tpu.memory_space<vmem>>, %arg4: memref<1x64xf32, #tpu.memory_space<vmem>>, %arg5: memref<1x1xf32, #tpu.memory_space<smem>>, %arg6: memref<1x8xf32, #tpu.memory_space<vmem>>) attributes {dimension_semantics = [#tpu.dimension_semantics<parallel>], iteration_bounds = array<i64: 1>, scalar_prefetch = 0 : i64, scratch_operands = 0 : i64, tpu.core_type = #tpu.core_type<tc>, window_params = [{transform_indices = @transform_0, window_bounds = array<i64: 8, 40>}, {pipeline_mode = #tpu.pipeline_mode<synchronous>, transform_indices = @transform_1, window_bounds = array<i64: 40, 64>}, {pipeline_mode = #tpu.pipeline_mode<synchronous>, transform_indices = @transform_2, window_bounds = array<i64: 1, 64>}, {pipeline_mode = #tpu.pipeline_mode<synchronous>, transform_indices = @transform_3, window_bounds = array<i64: 1, 64>}, {transform_indices = @transform_4, window_bounds = array<i64: 1, 1>}, {transform_indices = @transform_5, window_bounds = array<i64: 1, 8>}]} {
    %c0 = arith.constant 0 : index
    %c0_0 = arith.constant 0 : index
    %0 = vector.load %arg1[%c0, %c0_0] : memref<8x40xf32, #tpu.memory_space<vmem>>, vector<8x40xf32>
    %c0_1 = arith.constant 0 : index
    %c0_2 = arith.constant 0 : index
    %1 = vector.load %arg2[%c0_1, %c0_2] : memref<40x64xf32, #tpu.memory_space<vmem>>, vector<40x64xf32>
    %cst = arith.constant dense<0.000000e+00> : vector<8x64xf32>
    %2 = tpu.matmul %0, %1, %cst {dimension_numbers = #tpu.dot_dimension_numbers<[1], [0], [0], [1], [0, 0, 1, 1], [], []>} : vector<8x40xf32>, vector<40x64xf32>, vector<8x64xf32> -> vector<8x64xf32>
    %c0_3 = arith.constant 0 : index
    %c0_4 = arith.constant 0 : index
    %3 = vector.load %arg3[%c0_3, %c0_4] : memref<1x64xf32, #tpu.memory_space<vmem>>, vector<1x64xf32>
    %4 = vector.broadcast %3 : vector<1x64xf32> to vector<8x64xf32>
    %5 = arith.addf %2, %4 : vector<8x64xf32>
    %cst_5 = arith.constant 0.000000e+00 : f32
    %6 = vector.broadcast %cst_5 : f32 to vector<8x64xf32>
    %7 = arith.maximumf %5, %6 : vector<8x64xf32>
    %c0_6 = arith.constant 0 : index
    %c0_7 = arith.constant 0 : index
    %8 = vector.load %arg4[%c0_6, %c0_7] : memref<1x64xf32, #tpu.memory_space<vmem>>, vector<1x64xf32>
    %cst_8 = arith.constant dense<0.000000e+00> : vector<1x8xf32>
    %9 = tpu.matmul %8, %7, %cst_8 {dimension_numbers = #tpu.dot_dimension_numbers<[1], [1], [0], [0], [0, 0, 1, 0], [], []>} : vector<1x64xf32>, vector<8x64xf32>, vector<1x8xf32> -> vector<1x8xf32>
    %c0_9 = arith.constant 0 : index
    %c0_10 = arith.constant 0 : index
    %10 = memref.load %arg5[%c0_9, %c0_10] : memref<1x1xf32, #tpu.memory_space<smem>>
    %11 = vector.broadcast %10 : f32 to vector<1x8xf32>
    %12 = arith.addf %9, %11 : vector<1x8xf32>
    %13 = arith.negf %12 : vector<1x8xf32>
    %14 = math.exp %13 : vector<1x8xf32>
    %cst_11 = arith.constant 1.000000e+00 : f32
    %15 = vector.broadcast %cst_11 : f32 to vector<1x8xf32>
    %16 = arith.addf %15, %14 : vector<1x8xf32>
    %17 = arith.divf %15, %16 : vector<1x8xf32>
    %c0_12 = arith.constant 0 : index
    %c0_13 = arith.constant 0 : index
    %18 = vector.load %arg6[%c0_12, %c0_13] : memref<1x8xf32, #tpu.memory_space<vmem>>, vector<1x8xf32>
    tpu.vector_store %arg6[%c0_12, %c0_13], %17 {strides = array<i32>} : memref<1x8xf32, #tpu.memory_space<vmem>>, vector<1x8xf32>,
    return
  }
  func.func @transform_0(%arg0: i32) -> (i32, i32) {
    %c0_i32 = arith.constant 0 : i32
    %c0_i32_0 = arith.constant 0 : i32
    return %arg0, %c0_i32 : i32, i32
  }
  func.func @transform_1(%arg0: i32) -> (i32, i32) {
    %c0_i32 = arith.constant 0 : i32
    %c0_i32_0 = arith.constant 0 : i32
    %c0_i32_1 = arith.constant 0 : i32
    return %c0_i32, %c0_i32_0 : i32, i32
  }
  func.func @transform_2(%arg0: i32) -> (i32, i32) {
    %c0_i32 = arith.constant 0 : i32
    %c0_i32_0 = arith.constant 0 : i32
    %c0_i32_1 = arith.constant 0 : i32
    return %c0_i32, %c0_i32_0 : i32, i32
  }
  func.func @transform_3(%arg0: i32) -> (i32, i32) {
    %c0_i32 = arith.constant 0 : i32
    %c0_i32_0 = arith.constant 0 : i32
    %c0_i32_1 = arith.constant 0 : i32
    return %c0_i32, %c0_i32_0 : i32, i32
  }
  func.func @transform_4(%arg0: i32) -> (i32, i32) {
    %c0_i32 = arith.constant 0 : i32
    %c0_i32_0 = arith.constant 0 : i32
    %c0_i32_1 = arith.constant 0 : i32
    return %c0_i32, %c0_i32_0 : i32, i32
  }
  func.func @transform_5(%arg0: i32) -> (i32, i32) {
    %c0_i32 = arith.constant 0 : i32
    %c0_i32_0 = arith.constant 0 : i32
    return %arg0, %c0_i32 : i32, i32
  }
}

</mosaic_0001>

<bundles_post_ra>
// kernel: tpu_custom_call.1
= control target key start
LH: loop header
LB: loop body
LE: loop exit
PB: predicated region body
PF: predicated region fallthrough
CT: control target
= control target key end

     0   :  { %11 = vsyncpa [#allocation4], 0  ;;  %s451_s0 = inlined_call_operand.hbm [shape: f32[8,40], index: 0, kind: input, shape index: {}]   ;;  %s452_s1 = inlined_call_operand.hbm [shape: f32[40,64], index: 1, kind: input, shape index: {}]   ;;  %s453_s2 = inlined_call_operand.vmem [shape: f32[1,64], index: 2, kind: input, shape index: {}]   ;;  %s454_s3 = inlined_call_operand.vmem [shape: f32[1,64], index: 3, kind: input, shape index: {}]   ;;  %s455_s4 = inlined_call_operand.<no memory space> [shape: f32[1,1], index: 4, kind: input, shape index: {}]   ;;  %s456_s5 = inlined_call_operand.hbm [shape: f32[1,8], index: 5, kind: output, shape index: {}]  }
   0x1   :  { %12 = vsyncpa [#allocation7], 0 }
   0x2   :  { %13 = vsyncpa [#allocation5], 0  ;;  %s361_s18 = smov [#allocation3]   ;;  %s362_s20 = smov [#allocation6]  }
   0x3   :  { %s20_s19 = sshll.u32 %s361_s18, 4  ;;  %s29_s21 = sshll.u32 %s362_s20, 4  ;;  %s21_s19 = int_to_ptr.vmem [resolvable:$true] %s20_s19  ;;  %s399_s21 = int_to_ptr.vmem [resolvable:$true] %s29_s21 }
   0x4   :  { %s289_s24 = scalar_lea.hbm %s451_s0, 128 }
   0x5   :  { %p290_p0 = scmp.ne.s32.totalorder %s451_s0, %s289_s24  ;;  %p293_p1 = scmp.lt.u32.totalorder %s289_s24, %s451_s0 }
   0x7   :  { %p295_p2 = pnand %p293_p1, %p290_p0 }
   0x9   :  { %298 = shalt.err (!%p295_p2)
}
   0xa   :  { %s299_s29 = scalar_lea.vmem %s21_s19, 128  ;;  %p304_p4 = scmp.lt.s32.totalorder %s21_s19, %s21_s19 }
   0xb   :  { %p300_p3 = scmp.ne.s32.totalorder %s21_s19, %s299_s29  ;;  %p305_p5 = scmp.lt.s32.totalorder %s299_s29, %s299_s29 }
   0xd   :  { %p306_p6 = por %p305_p5, %p304_p4 }
   0xf   :  { %p307_p7 = pnand %p306_p6, %p300_p3 }
  0x11   :  { %310 = shalt.err (!%p307_p7)
}
  0x12   :  { %23 = dma.hbm_to_vmem [thread:$0]  %s451_s0, 128, %s21_s19, [#allocation4]  }
  0x13   :  { %s311_s9 = scalar_lea.hbm %s452_s1, 640 }
  0x14   :  { %p312_p8 = scmp.ne.s32.totalorder %s452_s1, %s311_s9  ;;  %p315_p9 = scmp.lt.u32.totalorder %s311_s9, %s452_s1 }
  0x16   :  { %p317_p10 = pnand %p315_p9, %p312_p8 }
  0x18   :  { %320 = shalt.err (!%p317_p10)
}
  0x19   :  { %s321_s14 = scalar_lea.vmem %s399_s21, 640  ;;  %p326_p12 = scmp.lt.s32.totalorder %s399_s21, %s399_s21 }
  0x1a   :  { %p322_p11 = scmp.ne.s32.totalorder %s399_s21, %s321_s14  ;;  %p327_p13 = scmp.lt.s32.totalorder %s321_s14, %s321_s14 }
  0x1c   :  { %p328_p0 = por %p327_p13, %p326_p12 }
  0x1e   :  { %p329_p1 = pnand %p328_p0, %p322_p11 }
  0x20   :  { %332 = shalt.err (!%p329_p1)
}
  0x21   :  { %s363_s0 = smov 128   ;;  %s364_s15 = smov 8  }
  0x22   :  { %35 = dma.hbm_to_vmem [thread:$0]  %s452_s1, 640, %s399_s21, [#allocation7], %s363_s0, %s363_s0, %s364_s15  }
  0x23   :  { %355 = dma.done.wait [#allocation4], 128  }
  0x24   :  { %356 = vsyncadd [#allocation4], 4294967168 }
  0x25   :  { %357 = dma.done.wait [#allocation7], 640  }
  0x26   :  { %358 = vsyncadd [#allocation7], 4294966656  ;;  %v365_v0 = vmov 0.0|0.0   ;;  %vm366_vm0 = vmmov 0   ;;  %v367_v1 = vmov 0.0   ;;  %v49_v2 = vld [vmem:[#allocation6] sm:$0xff]  ;;  %v138_v16 = vstv %s455_s4 }
  0x27   :  { %271 = vmatprep.subr.bf16.mxu0 %v365_v0  ;;  %263 = vmatprep.mubr.msk.f32.mxu0 %vm366_vm0, %v367_v1  ;;  %v50_v3 = vld [vmem:[#allocation6 + $0x8] sm:$0xff]  ;;  %v51_v4 = vld [vmem:[#allocation6 + $0x10] sm:$0xff]  ;;  %v52_v6 = vld [vmem:[#allocation6 + $0x18] sm:$0xff]  ;;  %vm61_vm1 = vcmask 326656   ;;  %vm139_vm2 = vcmask 523264   ;;  %vm222_vm3 = vcmask 57344  }
  0x28   :  { %266 = vmatprep.subr.mxu1 %v367_v1  ;;  %268 = vmatprep.mubr.msk.f32.mxu1 %vm366_vm0, %v367_v1  ;;  %v272_v5 = vpack.c.bf16 %v50_v3, %v49_v2  ;;  %v275_v7 = vpack.c.bf16 %v52_v6, %v51_v4  ;;  %v53_v8 = vld [vmem:[#allocation6 + $0x20] sm:$0xff]  ;;  %v48_v9 = vld [vmem:[#allocation3] sm:$0xff] }
  0x29   :  { %v240_v10 = vld [vmem:[%s453_s2] ss:$0 sm:$0xff]  ;;  %s368_s2 = smov [#allocation8]  }
  0x2a   :  { %273 = vmatpush3.bf16.msra.mxu0 %v272_v5  ;;  %v136_v15 = vld [vmem:[%s454_s3] sm:$0x1]  ;;  %s230_s23 = sshll.u32 %s368_s2, 4  ;;  %s231_s23 = int_to_ptr.vmem [resolvable:$true] %s230_s23 }
  0x2b   :  { %274 = vmatprep.subr.bf16.mxu0 %v365_v0  ;;  %s333_s3 = scalar_lea.vmem %s231_s23, 16  ;;  %s337_s24 = scalar_lea.vmem %s231_s23, 32 }
  0x2c   :  { %p334_p2 = scmp.ne.s32.totalorder %s231_s23, %s333_s3  ;;  %p338_p3 = scmp.lt.s32.totalorder %s231_s23, %s231_s23 }
  0x2d   :  { %p339_p4 = scmp.lt.s32.totalorder %s337_s24, %s333_s3 }
  0x2e   :  { %276 = vmatpush3.bf16.msra.mxu0 %v275_v7 }
  0x2f   :  { %261 = vmatprep.subr.mxu0 %v367_v1  ;;  %p340_p5 = por %p339_p4, %p338_p3 }
  0x31   :  { %p341_p6 = pnand %p340_p5, %p334_p2 }
  0x32   :  { %262 = vmatpush3.msra.mxu0 %v53_v8 }
  0x33   :  { %264 = vmatmul.mubr.msk.f32.vlgmr.msra.gmra.mrb[0].mxu0 %vm61_vm1, %v48_v9 }
 0x106   :  { %v131_v11 = vpop.f32.mrb[0].mxu0 }
 0x107   :  { %v132_v12 = vadd.f32 %v240_v10, %v131_v11  ;;  %v265_v13 = vpop.f32.mrb[1].mxu0 }
 0x109   :  { %v135_v14 = vmax.f32 %v132_v12, 0.0 }
 0x10b   :  { %267 = vmatpush3.xpose.msk.msra.mxu1 %vm139_vm2, %v135_v14 }
 0x10e   :  { %269 = vmatmul.mubr.msk.f32.vlgmr.msra.gmra.mrb[0].mxu1 %vm139_vm2, %v136_v15 }
 0x1e1   :  { %v212_v17 = vpop.f32.mrb[0].mxu1 }
 0x1e2   :  { %v213_v18 = vadd.f32 %v212_v17, %v138_v16  ;;  %v270_v19 = vpop.f32.mrb[1].mxu1 }
 0x1e4   :  { %v244_v20 = vmul.f32 -1.442695, %v213_v18 }
 0x1e6   :  { %285 = vpow2.f32 %v244_v20 }
 0x1f0   :  { %v286_v21 = vpop.eup %285 }
 0x1f1   :  { %v219_v22 = vadd.f32 1.0, %v286_v21 }
 0x1f3   :  { %287 = vrcp.f32 %v219_v22 }
 0x1fd   :  { %v288_v23 = vpop.eup %287 }
 0x1fe   :  { %223 = vst.msk [vmem:[#allocation8] sm:$0x1] %vm222_vm3, %v288_v23 }
 0x1ff   :  { %344 = shalt.err (!%p341_p6)
}
 0x200   :  { %s345_s26 = scalar_lea.hbm %s456_s5, 16 }
 0x201   :  { %p346_p7 = scmp.ne.s32.totalorder %s456_s5, %s345_s26  ;;  %p349_p8 = scmp.lt.u32.totalorder %s345_s26, %s456_s5 }
 0x203   :  { %p351_p9 = pnand %p349_p8, %p346_p7 }
 0x205   :  { %354 = shalt.err (!%p351_p9)
}
 0x206   :  { %233 = dma.vmem_to_hbm [thread:$0]  %s231_s23, 16, %s456_s5, [#allocation5]  }
 0x207   :  { %359 = dma.done.wait [#allocation5], 16  }
 0x208   :  { %360 = vsyncadd [#allocation5], 4294967280 }
 0x209   :  { %237 = vsyncpa [#allocation4], 1 }
 0x20a   :  { %238 = vsyncpa [#allocation7], 1 }
 0x20b   :  { %239 = vsyncpa [#allocation5], 1 }

</bundles_post_ra>
